<compile_context>
chip_gen: v7x
topology: tpu7x:2x2x1
jax: 0.10.0
libtpu: 0.0.40
codegen_flags: <defaults>
</compile_context>

<pallas_src>
import functools

import jax
import jax.numpy as jnp
from jax.experimental import pallas as pl
from jax.experimental.pallas import tpu as pltpu


_TARGET_BLOCK_BYTES = 8 * 1024 * 1024   # per-block; x2 for double buffering
_DEFAULT_MAX_TILE_ROWS = 8192


def _round_up(a: int, b: int) -> int:
    return (a + b - 1) // b * b


def _pick_tile_rows(rows: int, lane_width: int, itemsize: int,
                    max_tile_rows: int) -> int:
    """Biggest row tile (multiple of 8) that keeps a block <= ~8 MiB."""
    if rows <= 8:
        return rows                      # single block == full array (allowed)
    t = _TARGET_BLOCK_BYTES // (lane_width * itemsize)
    t = min(t, max_tile_rows, _round_up(rows, 8))
    return max(8, (t // 8) * 8)


def _pe_kernel(inv_freq_ref, o_ref, *, positions_per_row: int, embed_dim: int):
    """Writes one (tile_rows, lane_width) block of the sinusoidal table.

    Standard path (positions_per_row == 1): lane l is embed column l.
    Packed path  (positions_per_row == R): lane l is position offset l // E,
    embed column l % E (E = embed_dim is a power of two when packed).
    """
    T, L = o_ref.shape
    r0 = pl.program_id(0) * T

    row = jax.lax.broadcasted_iota(jnp.int32, (T, L), 0) + r0
    lane = jax.lax.broadcasted_iota(jnp.int32, (T, L), 1)

    if positions_per_row == 1:
        pos = row
        col = lane
    else:
        lg2_e = embed_dim.bit_length() - 1          # embed_dim is a power of 2
        pos = row * positions_per_row + (lane >> lg2_e)
        col = lane & (embed_dim - 1)

    # inv_freq_ref is (1, L) f32: inv_freq for the embed column of every lane
    # (duplicated per sin/cos pair, tiled across packed positions). No exp here.
    angle = pos.astype(jnp.float32) * inv_freq_ref[...]

    is_even = (col & 1) == 0
    # NOTE: both sin and cos are evaluated per element (2x EUP); see module
    # TODO(synk) above for why the half-width interleave was not used.
    o_ref[...] = jnp.where(is_even, jnp.sin(angle), jnp.cos(angle)).astype(o_ref.dtype)


def positional_encoding(x: jax.Array, max_seq_len: int, *,
                        dtype=jnp.float32,
                        max_tile_rows: int = _DEFAULT_MAX_TILE_ROWS) -> jax.Array:
    """Equivalent of PositionalEncoding(embed_dim, max_seq_len).forward(x).

    x: (batch, seq, embed) -> returns (seq, embed) sinusoidal table.
    `dtype` defaults to float32 (PyTorch semantics); pass jnp.bfloat16 only if
    the caller accepts the halved-precision table (halves HBM writeback).
    `max_tile_rows` is a tuning/testing knob for the row-tile size.
    """
    _, seq_len, embed_dim = x.shape
    assert seq_len <= max_seq_len, "seq_len exceeds max_seq_len"
    assert embed_dim % 2 == 0, "embed_dim must be even (matches PyTorch construction)"

    # Same arithmetic as the PyTorch __init__ (computed once, outside the kernel).
    inv_freq_half = jnp.exp(
        jnp.arange(0, embed_dim, 2, dtype=jnp.float32)
        * (-jnp.log(jnp.float32(10000.0)) / jnp.float32(embed_dim)))
    inv_freq = jnp.repeat(inv_freq_half, 2)          # (E,), one value per column

    itemsize = jnp.dtype(dtype).itemsize

    # Lane-dense packing for narrow embed dims: R positions per 128-lane row.
    packed = (embed_dim < 128) and (128 % embed_dim == 0)
    if packed:
        positions_per_row = 128 // embed_dim
        lane_width = 128
        rows = (seq_len + positions_per_row - 1) // positions_per_row
        inv_freq_lane = jnp.tile(inv_freq, (positions_per_row,))
    else:
        positions_per_row = 1
        lane_width = embed_dim
        rows = seq_len
        inv_freq_lane = inv_freq
    inv_freq_lane = inv_freq_lane.reshape(1, lane_width)

    tile_rows = _pick_tile_rows(rows, lane_width, itemsize, max_tile_rows)
    padded_rows = _round_up(rows, tile_rows)         # every block fully in-bounds
    grid = (padded_rows // tile_rows,)

    kernel = functools.partial(
        _pe_kernel,
        positions_per_row=positions_per_row,
        embed_dim=embed_dim)

    out = pl.pallas_call(
        kernel,
        out_shape=jax.ShapeDtypeStruct((padded_rows, lane_width), dtype),
        grid=grid,
        in_specs=[pl.BlockSpec((1, lane_width), lambda i: (0, 0))],
        out_specs=pl.BlockSpec((tile_rows, lane_width), lambda i: (i, 0)),
        compiler_params=pltpu.CompilerParams(
            dimension_semantics=("parallel",),
            vmem_limit_bytes=32 * 1024 * 1024),
    )(inv_freq_lane)

    if packed:
        # Contiguous row-major reshape (free) back to (padded positions, E).
        out = out.reshape(padded_rows * positions_per_row, embed_dim)
    return out[:seq_len]


def _reference(seq_len: int, embed_dim: int) -> jnp.ndarray:
    # Pure-JAX reference of the PyTorch __init__ table, sliced to seq_len.
    position = jnp.arange(seq_len, dtype=jnp.float32)[:, None]
    div_term = jnp.exp(jnp.arange(0, embed_dim, 2, dtype=jnp.float32)
                       * (-jnp.log(10000.0) / embed_dim))
    pe = jnp.zeros((seq_len, embed_dim), jnp.float32)
    pe = pe.at[:, 0::2].set(jnp.sin(position * div_term))
    pe = pe.at[:, 1::2].set(jnp.cos(position * div_term))
    return pe


if __name__ == "__main__":
    key = jax.random.PRNGKey(0)

    # Case 1: narrow embed (lane-dense packed path), same shapes as the module test.
    batch, seq, embed = 2, 8, 32
    max_seq_len = 64
    x = jax.random.normal(key, (batch, seq, embed), dtype=jnp.float32)
    out = jax.block_until_ready(positional_encoding(x, max_seq_len))
    ref = _reference(seq, embed)
    assert out.shape == (seq, embed), out.shape
    assert out.dtype == jnp.float32, out.dtype
    assert jnp.allclose(out, ref, atol=1e-5, rtol=1e-5), float(jnp.max(jnp.abs(out - ref)))

    # Case 2: wide embed (standard path) with a multi-block grid and row padding.
    batch2, seq2, embed2 = 2, 20, 256
    x2 = jax.random.normal(key, (batch2, seq2, embed2), dtype=jnp.float32)
    out2 = jax.block_until_ready(positional_encoding(x2, 64, max_tile_rows=8))
    ref2 = _reference(seq2, embed2)
    assert out2.shape == (seq2, embed2), out2.shape
    assert jnp.allclose(out2, ref2, atol=1e-5, rtol=1e-5), float(jnp.max(jnp.abs(out2 - ref2)))

    print("KERNEL_OK")
</pallas_src>

<mosaic_0001>
module attributes {stable_mosaic.version = 11 : i64} {
  func.func @_pe_kernel(%arg0: i32, %arg1: memref<1x128xf32, #tpu.memory_space<vmem>>, %arg2: memref<2x128xf32, #tpu.memory_space<vmem>>) attributes {dimension_semantics = [#tpu.dimension_semantics<parallel>], iteration_bounds = array<i64: 1>, scalar_prefetch = 0 : i64, scratch_operands = 0 : i64, tpu.core_type = #tpu.core_type<tc>, window_params = [{pipeline_mode = #tpu.pipeline_mode<synchronous>, transform_indices = @transform_0, window_bounds = array<i64: 1, 128>}, {transform_indices = @transform_1, window_bounds = array<i64: 2, 128>}]} {
    %c2_i32 = arith.constant 2 : i32
    %0 = arith.muli %arg0, %c2_i32 : i32
    %1 = tpu.iota {dimensions = array<i32: 0>} : vector<2x128xi32>
    %2 = vector.broadcast %0 : i32 to vector<2x128xi32>
    %3 = arith.addi %1, %2 : vector<2x128xi32>
    %4 = tpu.iota {dimensions = array<i32: 1>} : vector<2x128xi32>
    %c4_i32 = arith.constant 4 : i32
    %5 = vector.broadcast %c4_i32 : i32 to vector<2x128xi32>
    %6 = arith.muli %3, %5 : vector<2x128xi32>
    %c5_i32 = arith.constant 5 : i32
    %7 = vector.broadcast %c5_i32 : i32 to vector<2x128xi32>
    %8 = arith.shrsi %4, %7 : vector<2x128xi32>
    %9 = arith.addi %6, %8 : vector<2x128xi32>
    %c31_i32 = arith.constant 31 : i32
    %10 = vector.broadcast %c31_i32 : i32 to vector<2x128xi32>
    %11 = arith.andi %4, %10 : vector<2x128xi32>
    %12 = arith.sitofp %9 : vector<2x128xi32> to vector<2x128xf32>
    %c0 = arith.constant 0 : index
    %c0_0 = arith.constant 0 : index
    %13 = vector.load %arg1[%c0, %c0_0] : memref<1x128xf32, #tpu.memory_space<vmem>>, vector<1x128xf32>
    %14 = vector.broadcast %13 : vector<1x128xf32> to vector<2x128xf32>
    %15 = arith.mulf %12, %14 : vector<2x128xf32>
    %c1_i32 = arith.constant 1 : i32
    %16 = vector.broadcast %c1_i32 : i32 to vector<2x128xi32>
    %17 = arith.andi %11, %16 : vector<2x128xi32>
    %c0_i32 = arith.constant 0 : i32
    %18 = vector.broadcast %c0_i32 : i32 to vector<2x128xi32>
    %19 = arith.cmpi eq, %17, %18 : vector<2x128xi32>
    %20 = math.sin %15 : vector<2x128xf32>
    %21 = math.cos %15 : vector<2x128xf32>
    %22 = arith.select %19, %20, %21 : vector<2x128xi1>, vector<2x128xf32>
    %c0_1 = arith.constant 0 : index
    %c0_2 = arith.constant 0 : index
    %23 = vector.load %arg2[%c0_1, %c0_2] : memref<2x128xf32, #tpu.memory_space<vmem>>, vector<2x128xf32>
    tpu.vector_store %arg2[%c0_1, %c0_2], %22 {strides = array<i32>} : memref<2x128xf32, #tpu.memory_space<vmem>>, vector<2x128xf32>,
    return
  }
  func.func @transform_0(%arg0: i32) -> (i32, i32) {
    %c0_i32 = arith.constant 0 : i32
    %c0_i32_0 = arith.constant 0 : i32
    %c0_i32_1 = arith.constant 0 : i32
    return %c0_i32, %c0_i32_0 : i32, i32
  }
  func.func @transform_1(%arg0: i32) -> (i32, i32) {
    %c0_i32 = arith.constant 0 : i32
    %c0_i32_0 = arith.constant 0 : i32
    return %arg0, %c0_i32 : i32, i32
  }
}

</mosaic_0001>

<bundles_post_ra>
// kernel: tpu_custom_call.1
= control target key start
LH: loop header
LB: loop body
LE: loop exit
PB: predicated region body
PF: predicated region fallthrough
CT: control target
= control target key end

     0   :  { %6 = vsyncpa [#allocation3], 0  ;;  %s407_s0 = inlined_call_operand.hbm [shape: f32[1,128], index: 0, kind: input, shape index: {}]   ;;  %s408_s1 = inlined_call_operand.hbm [shape: f32[2,128], index: 1, kind: output, shape index: {}]  }
   0x1   :  { %7 = vsyncpa [#allocation4], 0  ;;  %s340_s6 = smov [#allocation2]   ;;  %s292_s10 = scalar_lea.hbm %s407_s0, 16 }
   0x2   :  { %s14_s7 = sshll.u32 %s340_s6, 4  ;;  %p293_p0 = scmp.ne.s32.totalorder %s407_s0, %s292_s10  ;;  %s15_s7 = int_to_ptr.vmem [resolvable:$true] %s14_s7 }
   0x3   :  { %p296_p1 = scmp.lt.u32.totalorder %s292_s10, %s407_s0 }
   0x5   :  { %p298_p2 = pnand %p296_p1, %p293_p0 }
   0x7   :  { %301 = shalt.err (!%p298_p2)
}
   0x8   :  { %s302_s15 = scalar_lea.vmem %s15_s7, 16  ;;  %s306_s16 = scalar_lea.vmem %s15_s7, 32 }
   0x9   :  { %p303_p3 = scmp.ne.s32.totalorder %s15_s7, %s302_s15  ;;  %p307_p4 = scmp.lt.s32.totalorder %s15_s7, %s15_s7 }
   0xa   :  { %p308_p5 = scmp.lt.s32.totalorder %s306_s16, %s302_s15 }
   0xc   :  { %p309_p6 = por %p308_p5, %p307_p4 }
   0xe   :  { %p310_p7 = pnand %p309_p6, %p303_p3 }
  0x10   :  { %313 = shalt.err (!%p310_p7)
}
  0x11   :  { %17 = dma.hbm_to_vmem [thread:$0]  %s407_s0, 16, %s15_s7, [#allocation3]  }
  0x12   :  { %336 = dma.done.wait [#allocation3], 16  }
  0x13   :  { %337 = vsyncadd [#allocation3], 4294967280  ;;  %v22_v0 = vlaneseq  ;;  %v267_v6 = vld [vmem:[#allocation2] ss:$0 sm:$0xff]  ;;  %v341_v20 = vmov 683565275  }
  0x14   :  { %v342_v22 = vmov 2475754826   ;;  %v343_v24 = vmov 2131351028   ;;  %v344_v26 = vmov 2102212464  }
  0x15   :  { %v23_v1 = vshrl.u32 %v22_v0, 7  ;;  %v370_v2 = vand.u32 127, %v22_v0  ;;  %v345_v28 = vmov 920167782   ;;  %v346_v35 = vmov 1326507024  }
  0x16   :  { %s347_s0 = smov [#allocation5]  }
  0x17   :  { %v28_v3 = vmul.u32 4, %v23_v1  ;;  %v29_v4 = vshra.s32 %v370_v2, 5  ;;  %s258_s19 = sshll.u32 %s347_s0, 4  ;;  %s259_s19 = int_to_ptr.vmem [resolvable:$true] %s258_s19 }
  0x18   :  { %s314_s20 = scalar_lea.vmem %s259_s19, 32  ;;  %p319_p9 = scmp.lt.s32.totalorder %s259_s19, %s259_s19 }
  0x19   :  { %v30_v5 = vadd.s32 %v29_v4, %v28_v3  ;;  %p315_p8 = scmp.ne.s32.totalorder %s259_s19, %s314_s20  ;;  %p320_p10 = scmp.lt.s32.totalorder %s314_s20, %s314_s20 }
  0x1b   :  { %v32_v7 = vcvt.s32.f32 %v30_v5  ;;  %p321_p11 = por %p320_p10, %p319_p9 }
  0x1d   :  { %v373_v8 = vmul.f32 %v267_v6, %v32_v7  ;;  %p322_p12 = pnand %p321_p11, %p315_p8 }
  0x1f   :  { %v46_v9 = vand.u32 2139095040, %v373_v8  ;;  %v43_v11 = vand.u32 2147483647, %v373_v8  ;;  %vm45_vm7 = vcmp.lt.s32.totalorder %v373_v8, 0  ;;  %vm135_vm15 = vweird.f32 %v373_v8 }
  0x21   :  { %v47_v10 = vshrl.u32 %v46_v9, 23  ;;  %v50_v14 = vand.u32 8388607, %v43_v11  ;;  %vm44_vm8 = vcmp.le.f32.partialorder %v43_v11, 0.7853982 }
  0x23   :  { %v268_v12 = vadd.s32 4294967169, %v47_v10  ;;  %v51_v17 = vor.u32 8388608, %v50_v14 }
  0x25   :  { %v53_v13 = vadd.s32 1, %v268_v12  ;;  %v91_v37 = vshll.u32 %v51_v17, 8 }
  0x27   :  { %vm54_vm0 = vcmp.gt.s32.totalorder %v53_v13, 0 }
  0x28   :  { %v55_v15 = vsel %vm54_vm0, %v53_v13, 0 }
  0x29   :  { %v57_v16 = vand.u32 31, %v55_v15  ;;  %v56_v18 = vshrl.u32 %v55_v15, 5 }
  0x2b   :  { %v58_v19 = vsub.s32 32, %v57_v16  ;;  %v60_v21 = vshll.u32 %v341_v20, %v57_v16  ;;  %v63_v23 = vshll.u32 %v342_v22, %v57_v16  ;;  %v66_v25 = vshll.u32 %v343_v24, %v57_v16 }
  0x2c   :  { %v69_v27 = vshll.u32 %v344_v26, %v57_v16  ;;  %v72_v29 = vshll.u32 %v345_v28, %v57_v16  ;;  %vm75_vm1 = vcmp.lt.s32.totalorder %v56_v18, 1  ;;  %vm78_vm2 = vcmp.lt.s32.totalorder %v56_v18, 4 }
  0x2d   :  { %v59_v30 = vshrl.u32 %v341_v20, %v58_v19  ;;  %v61_v31 = vshrl.u32 %v342_v22, %v58_v19  ;;  %v64_v32 = vshrl.u32 %v343_v24, %v58_v19  ;;  %v67_v33 = vshrl.u32 %v344_v26, %v58_v19 }
  0x2e   :  { %v70_v34 = vshrl.u32 %v345_v28, %v58_v19  ;;  %v73_v36 = vshrl.u32 %v346_v35, %v58_v19  ;;  %vm76_vm3 = vcmp.lt.s32.totalorder %v56_v18, 2  ;;  %vm77_vm4 = vcmp.lt.s32.totalorder %v56_v18, 3 }
  0x2f   :  { %v62_v38 = vor.u32 %v61_v31, %v60_v21  ;;  %v65_v39 = vor.u32 %v64_v32, %v63_v23  ;;  %v68_v40 = vor.u32 %v67_v33, %v66_v25 }
  0x30   :  { %v71_v41 = vor.u32 %v70_v34, %v69_v27  ;;  %v74_v42 = vor.u32 %v73_v36, %v72_v29 }
  0x31   :  { %v79_v43 = vsel %vm75_vm1, %v59_v30, %v62_v38  ;;  %v80_v44 = vsel %vm78_vm2, %v68_v40, 2102212464  ;;  %v83_v45 = vsel %vm75_vm1, %v62_v38, %v65_v39  ;;  %v87_v46 = vsel %vm75_vm1, %v65_v39, %v68_v40 }
  0x32   :  { %v81_v47 = vsel %vm77_vm4, %v65_v39, %v80_v44  ;;  %v84_v48 = vsel %vm78_vm2, %v71_v41, 920167782  ;;  %v88_v49 = vsel %vm78_vm2, %v74_v42, 1326507024  ;;  %v31_v30 = vand.u32 31, %v370_v2 }
  0x33   :  { %v85_v50 = vsel %vm77_vm4, %v68_v40, %v84_v48  ;;  %v89_v51 = vsel %vm77_vm4, %v71_v41, %v88_v49  ;;  %v82_v52 = vsel %vm76_vm3, %v79_v43, %v81_v47 }
  0x34   :  { %v86_v53 = vsel %vm76_vm3, %v83_v45, %v85_v50  ;;  %v90_v54 = vsel %vm76_vm3, %v87_v46, %v89_v51  ;;  %v98_v59 = vmul.u32 %v91_v37, %v82_v52  ;;  %v41_v34 = vand.u32 1, %v31_v30 }
  0x35   :  { %v379_v55 = vmul.u32.u64.low %v91_v37, %v90_v54  ;;  %v380_v56 = vmul.u32.u64.high %v91_v37, %v90_v54, %v379_v55  ;;  %v382_v57 = vmul.u32.u64.low %v91_v37, %v86_v53  ;;  %v383_v58 = vmul.u32.u64.high %v91_v37, %v86_v53, %v382_v57 }
  0x36   :  { %vm42_vm0 = vcmp.eq.s32.totalorder %v41_v34, 0 }
  0x37   :  { %vm100_vm5 = vc.u32 %v380_v56, %v382_v57  ;;  %v101_v60 = vadd.s32 1, %v383_v58  ;;  %v99_v9 = vadd.s32 %v382_v57, %v380_v56 }
  0x39   :  { %v102_v61 = vsel %vm100_vm5, %v101_v60, %v383_v58 }
  0x3a   :  { %v103_v62 = vadd.s32 %v102_v61, %v98_v59 }
  0x3c   :  { %v104_v63 = vadd.s32 536870912, %v103_v62 }
  0x3e   :  { %v105_v0 = vshrl.u32 %v104_v63, 30 }
  0x40   :  { %v106_v1 = vshll.u32 %v105_v0, 30  ;;  %v129_v22 = vsub.s32 4, %v105_v0 }
  0x42   :  { %v107_v3 = vsub.s32 %v103_v62, %v106_v1  ;;  %v130_v25 = vsel %vm45_vm7, %v129_v22, %v105_v0 }
  0x43   :  { %v132_v28 = vsel %vm44_vm8, 0, %v130_v25 }
  0x44   :  { %v109_v4 = vsub.s32 0, %v107_v3  ;;  %v136_v29 = vadd.s32 3, %v132_v28  ;;  %v240_v32 = vand.u32 3, %v132_v28 }
  0x46   :  { %v269_v5 = vmin.u32 %v109_v4, %v107_v3  ;;  %v137_v31 = vand.u32 3, %v136_v29  ;;  %vm245_vm10 = vcmp.eq.s32.totalorder %v240_v32, 2  ;;  %vm242_vm12 = vcmp.eq.s32.totalorder %v240_v32, 0 }
  0x47   :  { %vm241_vm14 = vcmp.lt.s32.totalorder %v240_v32, 2 }
  0x48   :  { %v111_v6 = vclz %v269_v5  ;;  %vm142_vm9 = vcmp.eq.s32.totalorder %v137_v31, 2  ;;  %vm139_vm11 = vcmp.eq.s32.totalorder %v137_v31, 0  ;;  %vm138_vm13 = vcmp.lt.s32.totalorder %v137_v31, 2 }
  0x4a   :  { %v270_v7 = vadd.s32 4294967294, %v111_v6 }
  0x4c   :  { %vm271_vm6 = vcmp.lt.s32.totalorder %v270_v7, 0 }
  0x4d   :  { %v114_v10 = vsel %vm271_vm6, 0, %v270_v7 }
  0x4e   :  { %v115_v12 = vsub.s32 32, %v114_v10  ;;  %v116_v13 = vshll.u32 %v107_v3, %v114_v10  ;;  %v119_v14 = vsub.s32 4294967266, %v114_v10 }
  0x50   :  { %v117_v15 = vshrl.u32 %v99_v9, %v115_v12  ;;  %v120_v16 = vadd.s32 127, %v119_v14 }
  0x52   :  { %v118_v17 = vor.u32 %v117_v15, %v116_v13  ;;  %v121_v18 = vshll.u32 %v120_v16, 23 }
  0x54   :  { %v122_v19 = vor.u32 4788187, %v121_v18  ;;  %v125_v20 = vcvt.s32.f32 %v118_v17 }
  0x56   :  { %v123_v21 = vand.u32 2147483647, %v122_v19 }
  0x58   :  { %v126_v23 = vmul.f32 %v125_v20, %v123_v21 }
  0x5a   :  { %v127_v24 = vxor.u32 2147483648, %v126_v23 }
  0x5c   :  { %v128_v26 = vsel %vm45_vm7, %v127_v24, %v126_v23 }
  0x5d   :  { %v131_v27 = vsel %vm44_vm8, %v373_v8, %v128_v26 }
  0x5e   :  { %288 = vcosq.f32 %v131_v27 }
  0x5f   :  { %290 = vsinq.f32 %v131_v27 }
  0x68   :  { %v289_v33 = vpop.eup %288 }
  0x69   :  { %v291_v35 = vpop.eup %290  ;;  %v143_v11 = vxor.u32 2147483648, %v289_v33 }
  0x6a   :  { %v140_v36 = vxor.u32 2147483648, %v291_v35 }
  0x6b   :  { %v144_v37 = vsel %vm142_vm9, %v143_v11, %v291_v35  ;;  %v247_v38 = vsel %vm245_vm10, %v143_v11, %v291_v35 }
  0x6c   :  { %v141_v2 = vsel %vm139_vm11, %v289_v33, %v140_v36  ;;  %v244_v39 = vsel %vm242_vm12, %v289_v33, %v140_v36 }
  0x6d   :  { %v145_v40 = vsel %vm138_vm13, %v141_v2, %v144_v37  ;;  %v248_v41 = vsel %vm241_vm14, %v244_v39, %v247_v38 }
  0x6e   :  { %v146_v42 = vsel %vm135_vm15, nan, %v145_v40  ;;  %v249_v43 = vsel %vm135_vm15, nan, %v248_v41 }
  0x6f   :  { %v250_v44 = vsel %vm42_vm0, %v146_v42, %v249_v43 }
  0x70   :  { %251 = vst [vmem:[#allocation5] sm:$0x3] %v250_v44 }
  0x71   :  { %325 = shalt.err (!%p322_p12)
}
  0x72   :  { %s326_s23 = scalar_lea.hbm %s408_s1, 32 }
  0x73   :  { %p327_p13 = scmp.ne.s32.totalorder %s408_s1, %s326_s23  ;;  %p330_p0 = scmp.lt.u32.totalorder %s326_s23, %s408_s1 }
  0x75   :  { %p332_p1 = pnand %p330_p0, %p327_p13 }
  0x77   :  { %335 = shalt.err (!%p332_p1)
}
  0x78   :  { %261 = dma.vmem_to_hbm [thread:$0]  %s259_s19, 32, %s408_s1, [#allocation4]  }
  0x79   :  { %338 = dma.done.wait [#allocation4], 32  }
  0x7a   :  { %339 = vsyncadd [#allocation4], 4294967264 }
  0x7b   :  { %265 = vsyncpa [#allocation3], 1 }
  0x7c   :  { %266 = vsyncpa [#allocation4], 1 }

</bundles_post_ra>
